<compile_context>
chip_gen: v7x
topology: tpu7x:2x2x1
jax: 0.10.0
libtpu: 0.0.40
codegen_flags: <defaults>
</compile_context>

<pallas_src>
import jax
import jax.numpy as jnp
from jax.experimental import pallas as pl
from jax.experimental.pallas import tpu as pltpu


def _round_up(x, m):
    return (x + m - 1) // m * m


def _attention_kernel(g_ref, x_ref, wg_ref, bg_ref, wx_ref, bx_ref,
                      wpsi_ref, bpsi_ref, o_ref):
    g = g_ref[0]                                   # (F_g, TILE)  pixels on lanes
    x = x_ref[0]                                   # (F_l, TILE)

    # 1x1 conv (+ folded BN): weights @ pixel-matrix, f32 accumulation on MXU.
    g1 = jnp.dot(wg_ref[...], g, preferred_element_type=jnp.float32) + bg_ref[...]
    x1 = jnp.dot(wx_ref[...], x, preferred_element_type=jnp.float32) + bx_ref[...]
    h = jnp.maximum(g1 + x1, 0.0)                  # (F_int, TILE)  ReLU

    # psi: single-channel projection as a weighted sublane sum (exact f32),
    # then sigmoid on the EUP.
    logit = jnp.sum(h * wpsi_ref[...], axis=0, keepdims=True) + bpsi_ref[0, 0]
    psi = jax.nn.sigmoid(logit)                    # (1, TILE)

    # Gate x: broadcast psi over channels; lane-dense unmasked store.
    o_ref[0] = x * psi


def _fold_bn(conv_w, conv_b, gamma, beta, mean, var, eps=1e-5):
    """Fold eval-mode BatchNorm into a 1x1 conv. Returns (C_out,C_in),(C_out,1)."""
    scale = gamma / jnp.sqrt(var + eps)            # (C_out,)
    w_eff = conv_w * scale[:, None]                # (C_out, C_in)
    b_eff = (conv_b - mean) * scale + beta         # (C_out,)
    return w_eff, b_eff[:, None]


def _pick_tile(HW, F_g, F_l, F_int, target_tile, vmem_budget_bytes=8 << 20):
    """Largest 128-multiple pixel tile that fits a conservative VMEM budget
    (double-buffered g/x/out blocks + the f32 intermediate), capped at target.
    Budget is well under v7x's 64 MiB VMEM even with resident weights."""
    bytes_per_px = 4 * 2 * (F_g + 2 * F_l) + 4 * F_int
    max_tile = max(128, (vmem_budget_bytes // bytes_per_px) // 128 * 128)
    return min(target_tile, max_tile, _round_up(HW, 128))


def attention_block(g, x, params, *, tile_hw=2048):
    """g: (N, F_g, H, W), x: (N, F_l, H, W) float32 NCHW. Returns (N, F_l, H, W)."""
    N, F_g, H, W = g.shape
    _, F_l, _, _ = x.shape
    HW = H * W

    # ---- glue: fold eval-mode BatchNorm into the 1x1 conv weights/biases ----
    wg, bg = _fold_bn(params["wg"], params["bg"], params["bn_g_gamma"],
                      params["bn_g_beta"], params["bn_g_mean"], params["bn_g_var"])
    wx, bx = _fold_bn(params["wx"], params["bx"], params["bn_x_gamma"],
                      params["bn_x_beta"], params["bn_x_mean"], params["bn_x_var"])
    wpsi_row, bpsi = _fold_bn(params["wpsi"], params["bpsi"], params["bn_p_gamma"],
                              params["bn_p_beta"], params["bn_p_mean"], params["bn_p_var"])
    wpsi = wpsi_row.T                              # (F_int, 1) column for sublane sum
    F_int = wg.shape[0]

    # ---- glue: keep NCHW, just flatten spatial (free reshape, no transpose) ----
    g3 = g.reshape(N, F_g, HW)
    x3 = x.reshape(N, F_l, HW)

    # ---- pixel tiling: lane-dense tiles, pad HW to a tile multiple if needed ----
    tile = _pick_tile(HW, F_g, F_l, F_int, tile_hw)
    HW_pad = _round_up(HW, tile)
    if HW_pad != HW:
        pad = HW_pad - HW
        g3 = jnp.pad(g3, ((0, 0), (0, 0), (0, pad)))
        x3 = jnp.pad(x3, ((0, 0), (0, 0), (0, pad)))

    grid = (N, HW_pad // tile)
    P = N * HW_pad

    const2d = lambda shp: pl.BlockSpec(shp, lambda n, j: (0, 0))

    out3 = pl.pallas_call(
        _attention_kernel,
        out_shape=jax.ShapeDtypeStruct((N, F_l, HW_pad), jnp.float32),
        grid_spec=pltpu.PrefetchScalarGridSpec(
            num_scalar_prefetch=0,
            grid=grid,
            in_specs=[
                pl.BlockSpec((1, F_g, tile), lambda n, j: (n, 0, j)),   # g
                pl.BlockSpec((1, F_l, tile), lambda n, j: (n, 0, j)),   # x
                const2d((F_int, F_g)),                                  # wg
                const2d((F_int, 1)),                                    # bg
                const2d((F_int, F_l)),                                  # wx
                const2d((F_int, 1)),                                    # bx
                const2d((F_int, 1)),                                    # wpsi (column)
                pl.BlockSpec(memory_space=pltpu.MemorySpace.SMEM),      # bpsi scalar
            ],
            out_specs=pl.BlockSpec((1, F_l, tile), lambda n, j: (n, 0, j)),
        ),
        compiler_params=pltpu.CompilerParams(
            dimension_semantics=("parallel", "parallel")),
        cost_estimate=pl.CostEstimate(
            flops=2 * P * F_int * (F_g + F_l + 1),
            transcendentals=P,
            bytes_accessed=4 * P * (F_g + 2 * F_l)),
    )(g3, x3, wg, bg, wx, bx, wpsi, bpsi)

    if HW_pad != HW:
        out3 = out3[:, :, :HW]
    return out3.reshape(N, F_l, H, W)


def _reference(g, x, params):
    """Plain-JAX reference mirroring the PyTorch forward (eval-mode BN)."""
    def conv_bn(inp, w, b, gamma, beta, mean, var, eps=1e-5):
        y = jnp.einsum("nchw,oc->nohw", inp, w) + b[None, :, None, None]
        scale = gamma / jnp.sqrt(var + eps)
        return (y - mean[None, :, None, None]) * scale[None, :, None, None] \
               + beta[None, :, None, None]

    g1 = conv_bn(g, params["wg"], params["bg"], params["bn_g_gamma"], params["bn_g_beta"],
                 params["bn_g_mean"], params["bn_g_var"])
    x1 = conv_bn(x, params["wx"], params["bx"], params["bn_x_gamma"], params["bn_x_beta"],
                 params["bn_x_mean"], params["bn_x_var"])
    h = jnp.maximum(g1 + x1, 0.0)
    psi = conv_bn(h, params["wpsi"], params["bpsi"], params["bn_p_gamma"], params["bn_p_beta"],
                  params["bn_p_mean"], params["bn_p_var"])
    psi = jax.nn.sigmoid(psi)
    return x * psi


def make_params(key, F_g, F_l, F_int):
    ks = jax.random.split(key, 8)
    return {
        "wg":   0.3 * jax.random.normal(ks[0], (F_int, F_g), jnp.float32),
        "bg":   0.1 * jax.random.normal(ks[1], (F_int,), jnp.float32),
        "wx":   0.3 * jax.random.normal(ks[2], (F_int, F_l), jnp.float32),
        "bx":   0.1 * jax.random.normal(ks[3], (F_int,), jnp.float32),
        "wpsi": 0.3 * jax.random.normal(ks[4], (1, F_int), jnp.float32),
        "bpsi": 0.1 * jax.random.normal(ks[5], (1,), jnp.float32),
        # BatchNorm (eval mode) parameters / running stats
        "bn_g_gamma": jnp.ones((F_int,), jnp.float32),
        "bn_g_beta":  jnp.zeros((F_int,), jnp.float32),
        "bn_g_mean":  0.05 * jax.random.normal(ks[6], (F_int,), jnp.float32),
        "bn_g_var":   jnp.ones((F_int,), jnp.float32),
        "bn_x_gamma": jnp.ones((F_int,), jnp.float32),
        "bn_x_beta":  jnp.zeros((F_int,), jnp.float32),
        "bn_x_mean":  0.05 * jax.random.normal(ks[7], (F_int,), jnp.float32),
        "bn_x_var":   jnp.ones((F_int,), jnp.float32),
        "bn_p_gamma": jnp.ones((1,), jnp.float32),
        "bn_p_beta":  jnp.zeros((1,), jnp.float32),
        "bn_p_mean":  jnp.zeros((1,), jnp.float32),
        "bn_p_var":   jnp.ones((1,), jnp.float32),
    }


if __name__ == "__main__":
    key = jax.random.PRNGKey(0)
    k_g, k_x, k_p = jax.random.split(key, 3)

    N, F_g, F_l, F_int, H, W = 2, 4, 4, 8, 16, 16
    g = jax.random.normal(k_g, (N, F_g, H, W), jnp.float32)
    x = jax.random.normal(k_x, (N, F_l, H, W), jnp.float32)
    params = make_params(k_p, F_g, F_l, F_int)

    out = attention_block(g, x, params)
    out = jax.block_until_ready(out)

    ref = _reference(g, x, params)
    assert out.shape == (N, F_l, H, W)
    assert jnp.allclose(out, ref, atol=1e-4, rtol=1e-4), \
        f"max err {jnp.max(jnp.abs(out - ref))}"

    print("KERNEL_OK")
</pallas_src>

<mosaic_0001>
module attributes {stable_mosaic.version = 11 : i64} {
  func.func @_attention_kernel(%arg0: i32, %arg1: i32, %arg2: memref<1x4x256xf32, #tpu.memory_space<vmem>>, %arg3: memref<1x4x256xf32, #tpu.memory_space<vmem>>, %arg4: memref<8x4xf32, #tpu.memory_space<vmem>>, %arg5: memref<8x1xf32, #tpu.memory_space<vmem>>, %arg6: memref<8x4xf32, #tpu.memory_space<vmem>>, %arg7: memref<8x1xf32, #tpu.memory_space<vmem>>, %arg8: memref<8x1xf32, #tpu.memory_space<vmem>>, %arg9: memref<1x1xf32, #tpu.memory_space<smem>>, %arg10: memref<1x4x256xf32, #tpu.memory_space<vmem>>) attributes {dimension_semantics = [#tpu.dimension_semantics<parallel>, #tpu.dimension_semantics<parallel>], iteration_bounds = array<i64: 2, 1>, scalar_prefetch = 0 : i64, scratch_operands = 0 : i64, tpu.core_type = #tpu.core_type<tc>, window_params = [{transform_indices = @transform_0, window_bounds = array<i64: 1, 4, 256>}, {transform_indices = @transform_1, window_bounds = array<i64: 1, 4, 256>}, {pipeline_mode = #tpu.pipeline_mode<synchronous>, transform_indices = @transform_2, window_bounds = array<i64: 8, 4>}, {pipeline_mode = #tpu.pipeline_mode<synchronous>, transform_indices = @transform_3, window_bounds = array<i64: 8, 1>}, {pipeline_mode = #tpu.pipeline_mode<synchronous>, transform_indices = @transform_4, window_bounds = array<i64: 8, 4>}, {pipeline_mode = #tpu.pipeline_mode<synchronous>, transform_indices = @transform_5, window_bounds = array<i64: 8, 1>}, {pipeline_mode = #tpu.pipeline_mode<synchronous>, transform_indices = @transform_6, window_bounds = array<i64: 8, 1>}, {transform_indices = @transform_7, window_bounds = array<i64: 1, 1>}, {transform_indices = @transform_8, window_bounds = array<i64: 1, 4, 256>}]} {
    %c0 = arith.constant 0 : index
    %c0_0 = arith.constant 0 : index
    %c0_1 = arith.constant 0 : index
    %0 = vector.load %arg2[%c0, %c0_0, %c0_1] : memref<1x4x256xf32, #tpu.memory_space<vmem>>, vector<1x4x256xf32>
    %1 = vector.shape_cast %0 : vector<1x4x256xf32> to vector<4x256xf32>
    %c0_2 = arith.constant 0 : index
    %c0_3 = arith.constant 0 : index
    %c0_4 = arith.constant 0 : index
    %2 = vector.load %arg3[%c0_2, %c0_3, %c0_4] : memref<1x4x256xf32, #tpu.memory_space<vmem>>, vector<1x4x256xf32>
    %3 = vector.shape_cast %2 : vector<1x4x256xf32> to vector<4x256xf32>
    %c0_5 = arith.constant 0 : index
    %c0_6 = arith.constant 0 : index
    %4 = vector.load %arg4[%c0_5, %c0_6] : memref<8x4xf32, #tpu.memory_space<vmem>>, vector<8x4xf32>
    %cst = arith.constant dense<0.000000e+00> : vector<8x256xf32>
    %5 = tpu.matmul %4, %1, %cst {dimension_numbers = #tpu.dot_dimension_numbers<[1], [0], [0], [1], [0, 0, 1, 1], [], []>} : vector<8x4xf32>, vector<4x256xf32>, vector<8x256xf32> -> vector<8x256xf32>
    %c0_7 = arith.constant 0 : index
    %c0_8 = arith.constant 0 : index
    %6 = vector.load %arg5[%c0_7, %c0_8] : memref<8x1xf32, #tpu.memory_space<vmem>>, vector<8x1xf32>
    %7 = vector.broadcast %6 : vector<8x1xf32> to vector<8x256xf32>
    %8 = arith.addf %5, %7 : vector<8x256xf32>
    %c0_9 = arith.constant 0 : index
    %c0_10 = arith.constant 0 : index
    %9 = vector.load %arg6[%c0_9, %c0_10] : memref<8x4xf32, #tpu.memory_space<vmem>>, vector<8x4xf32>
    %cst_11 = arith.constant dense<0.000000e+00> : vector<8x256xf32>
    %10 = tpu.matmul %9, %3, %cst_11 {dimension_numbers = #tpu.dot_dimension_numbers<[1], [0], [0], [1], [0, 0, 1, 1], [], []>} : vector<8x4xf32>, vector<4x256xf32>, vector<8x256xf32> -> vector<8x256xf32>
    %c0_12 = arith.constant 0 : index
    %c0_13 = arith.constant 0 : index
    %11 = vector.load %arg7[%c0_12, %c0_13] : memref<8x1xf32, #tpu.memory_space<vmem>>, vector<8x1xf32>
    %12 = vector.broadcast %11 : vector<8x1xf32> to vector<8x256xf32>
    %13 = arith.addf %10, %12 : vector<8x256xf32>
    %14 = arith.addf %8, %13 : vector<8x256xf32>
    %cst_14 = arith.constant 0.000000e+00 : f32
    %15 = vector.broadcast %cst_14 : f32 to vector<8x256xf32>
    %16 = arith.maximumf %14, %15 : vector<8x256xf32>
    %c0_15 = arith.constant 0 : index
    %c0_16 = arith.constant 0 : index
    %17 = vector.load %arg8[%c0_15, %c0_16] : memref<8x1xf32, #tpu.memory_space<vmem>>, vector<8x1xf32>
    %18 = vector.broadcast %17 : vector<8x1xf32> to vector<8x256xf32>
    %19 = arith.mulf %16, %18 : vector<8x256xf32>
    %cst_17 = arith.constant dense<0.000000e+00> : vector<256xf32>
    %20 = vector.multi_reduction <add>, %19, %cst_17 [0] : vector<8x256xf32> to vector<256xf32>
    %21 = vector.shape_cast %20 : vector<256xf32> to vector<1x256xf32>
    %c0_18 = arith.constant 0 : index
    %c0_19 = arith.constant 0 : index
    %22 = memref.load %arg9[%c0_18, %c0_19] : memref<1x1xf32, #tpu.memory_space<smem>>
    %23 = vector.broadcast %22 : f32 to vector<1x256xf32>
    %24 = arith.addf %21, %23 : vector<1x256xf32>
    %25 = arith.negf %24 : vector<1x256xf32>
    %26 = math.exp %25 : vector<1x256xf32>
    %cst_20 = arith.constant 1.000000e+00 : f32
    %27 = vector.broadcast %cst_20 : f32 to vector<1x256xf32>
    %28 = arith.addf %27, %26 : vector<1x256xf32>
    %29 = arith.divf %27, %28 : vector<1x256xf32>
    %30 = vector.broadcast %29 : vector<1x256xf32> to vector<4x256xf32>
    %31 = arith.mulf %3, %30 : vector<4x256xf32>
    %c0_21 = arith.constant 0 : index
    %c0_22 = arith.constant 0 : index
    %c0_23 = arith.constant 0 : index
    %32 = vector.load %arg10[%c0_21, %c0_22, %c0_23] : memref<1x4x256xf32, #tpu.memory_space<vmem>>, vector<1x4x256xf32>
    %33 = vector.shape_cast %32 : vector<1x4x256xf32> to vector<4x256xf32>
    %34 = vector.shape_cast %31 : vector<4x256xf32> to vector<1x4x256xf32>
    tpu.vector_store %arg10[%c0_21, %c0_22, %c0_23], %34 {strides = array<i32>} : memref<1x4x256xf32, #tpu.memory_space<vmem>>, vector<1x4x256xf32>,
    return
  }
  func.func @transform_0(%arg0: i32, %arg1: i32) -> (i32, i32, i32) {
    %c0_i32 = arith.constant 0 : i32
    %c0_i32_0 = arith.constant 0 : i32
    return %arg0, %c0_i32, %arg1 : i32, i32, i32
  }
  func.func @transform_1(%arg0: i32, %arg1: i32) -> (i32, i32, i32) {
    %c0_i32 = arith.constant 0 : i32
    %c0_i32_0 = arith.constant 0 : i32
    return %arg0, %c0_i32, %arg1 : i32, i32, i32
  }
  func.func @transform_2(%arg0: i32, %arg1: i32) -> (i32, i32) {
    %c0_i32 = arith.constant 0 : i32
    %c0_i32_0 = arith.constant 0 : i32
    %c0_i32_1 = arith.constant 0 : i32
    return %c0_i32, %c0_i32_0 : i32, i32
  }
  func.func @transform_3(%arg0: i32, %arg1: i32) -> (i32, i32) {
    %c0_i32 = arith.constant 0 : i32
    %c0_i32_0 = arith.constant 0 : i32
    %c0_i32_1 = arith.constant 0 : i32
    return %c0_i32, %c0_i32_0 : i32, i32
  }
  func.func @transform_4(%arg0: i32, %arg1: i32) -> (i32, i32) {
    %c0_i32 = arith.constant 0 : i32
    %c0_i32_0 = arith.constant 0 : i32
    %c0_i32_1 = arith.constant 0 : i32
    return %c0_i32, %c0_i32_0 : i32, i32
  }
  func.func @transform_5(%arg0: i32, %arg1: i32) -> (i32, i32) {
    %c0_i32 = arith.constant 0 : i32
    %c0_i32_0 = arith.constant 0 : i32
    %c0_i32_1 = arith.constant 0 : i32
    return %c0_i32, %c0_i32_0 : i32, i32
  }
  func.func @transform_6(%arg0: i32, %arg1: i32) -> (i32, i32) {
    %c0_i32 = arith.constant 0 : i32
    %c0_i32_0 = arith.constant 0 : i32
    %c0_i32_1 = arith.constant 0 : i32
    return %c0_i32, %c0_i32_0 : i32, i32
  }
  func.func @transform_7(%arg0: i32, %arg1: i32) -> (i32, i32) {
    %c0_i32 = arith.constant 0 : i32
    %c0_i32_0 = arith.constant 0 : i32
    %c0_i32_1 = arith.constant 0 : i32
    return %c0_i32, %c0_i32_0 : i32, i32
  }
  func.func @transform_8(%arg0: i32, %arg1: i32) -> (i32, i32, i32) {
    %c0_i32 = arith.constant 0 : i32
    %c0_i32_0 = arith.constant 0 : i32
    return %arg0, %c0_i32, %arg1 : i32, i32, i32
  }
}

</mosaic_0001>

<bundles_post_ra>
// kernel: tpu_custom_call.1
= control target key start
LH: loop header
LB: loop body
LE: loop exit
PB: predicated region body
PF: predicated region fallthrough
CT: control target
= control target key end

     0   :  { %s1075_s0 = inlined_call_operand.vmem [shape: f32[2,4,256], index: 0, kind: input, shape index: {}]   ;;  %s1076_s1 = inlined_call_operand.vmem [shape: f32[2,4,256], index: 1, kind: input, shape index: {}]   ;;  %s1077_s2 = inlined_call_operand.vmem [shape: f32[8,4], index: 2, kind: input, shape index: {}]   ;;  %s1078_s3 = inlined_call_operand.vmem [shape: f32[8,1], index: 3, kind: input, shape index: {}]   ;;  %s1079_s4 = inlined_call_operand.vmem [shape: f32[8,4], index: 4, kind: input, shape index: {}]   ;;  %s1080_s5 = inlined_call_operand.vmem [shape: f32[8,1], index: 5, kind: input, shape index: {}]   ;;  %s1081_s6 = inlined_call_operand.vmem [shape: f32[8,1], index: 6, kind: input, shape index: {}]   ;;  %s1082_s7 = inlined_call_operand.<no memory space> [shape: f32[1,1], index: 7, kind: input, shape index: {}]   ;;  %s1083_s8 = inlined_call_operand.hbm [shape: f32[2,4,256], index: 8, kind: output, shape index: {}]  }
   0x1   :  { %13 = sst [smem:[#allocation2]] %s1082_s7 }
   0x2   :  { %14 = vsyncpa [#allocation4], 0 }
   0x3   :  { %16 = vsyncpa [#allocation4 + $0x1], 0  ;;  %s939_s29 = smov 0   ;;  %s941_s30 = smov 0  }
   0x4   :  { %s943_s9 = smov 0   ;;  %s945_s10 = smov 0  }
   0x5   :  { %s947_s11 = smov 0   ;;  %s949_s12 = smov 0  }
   0x6 LB: > { %s707_s7 = sadd.s32 4294967295, %s886_s12   ;;  %s708_s13 = sadd.s32 4294967294, %s886_s12   ;;  %s886_s12 = sphi %s949_s12, %s22_s12   ;;  %s882_s11 = sphi %s947_s11, %s1090_s11   ;;  %s878_s10 = sphi %s945_s10, %s1089_s10   ;;  %s874_s9 = sphi %s943_s9, %s1088_s9   ;;  %s870_s30 = sphi %s941_s30, %s1087_s30   ;;  %s866_s29 = sphi %s939_s29, %s1086_s29  }
   0x7   : > { %s34_s14 = sadd.s32 1, %s882_s11  ;;  %s225_s15 = sadd.s32 1, %s874_s9 }
   0x8   : > { %p36_p0 = scmp.ge.s32.totalorder %s34_s14, 2  ;;  %p235_p1 = scmp.ne.s32.totalorder %s874_s9, %s870_s30 }
   0x9   : > { %p236_p2 = scmp.eq.s32.totalorder %s707_s7, 1  ;;  %p241_p3 = scmp.ne.s32.totalorder %s870_s30, %s866_s29 }
   0xa   : > { %s1092_s14 = smov (%p36_p0, %s34_s14), 0  ;;  %p242_p5 = scmp.eq.s32.totalorder %s708_s13, 1 }
   0xb   : > { %p979_p4 = por %p236_p2, %p235_p1  ;;  %s220_s17 = ssub.s32 %s882_s11, %s1092_s14 }
   0xc   : > { %p711_p6 = scmp.ge.s32.totalorder %s886_s12, 1  ;;  %p223_p7 = scmp.eq.s32.totalorder %s220_s17, 0 }
   0xd   : > { %p986_p8 = por %p242_p5, %p241_p3  ;;  %p304_p9 = scmp.lt.s32.totalorder %s886_s12, 3 }
   0xe   : > { %s992_s19 = scalar_select %p223_p7, %s874_s9, %s225_s15  }
   0xf   : > { %p305_p10 = pnand %p711_p6, %p304_p9 }
  0x10   : > { %p352_p11 = scmp.lt.s32.totalorder (!%p305_p10), %s878_s10, 1  ;;  %v888_v0 = vmov (!%p305_p10), 0.0   ;;  %v375_v1 = vld [vmem:[%s1078_s3] sm:$0xff] (!%p305_p10)  ;;  %v889_v3 = vmov (!%p305_p10), 0   ;;  %vm387_vm0 = vcmask (!%p305_p10), 1043456   ;;  %vm383_vm1 = vcmask (!%p305_p10), 31744  }
  0x11   : > { %308 = sbr.rel (%p305_p10) target bundleno = 314 (0x13a), region = 52  ;;  %456 = vmatprep.mubr.f32.mxu1 (!%p305_p10), %v888_v0  ;;  %543 = vmatprep.mubr.f32.mxu0 (!%p305_p10), %v888_v0  ;;  %v554_v2 = vld [vmem:[%s1081_s6] sm:$0xff] (!%p305_p10)  ;;  %s348_s26 = sand.u32 (!%p305_p10), 1, %s870_s30  }
  0x12   : > { %796 = vset.pattern.permute.xlu0 (!%p305_p10), %v889_v3  ;;  %797 = vset.pattern.permute.xlu1 (!%p305_p10), %v889_v3  ;;  %v464_v4 = vld [vmem:[%s1080_s5] sm:$0xff] (!%p305_p10)  ;;  %s712_s27 = sshll.u32 (!%p305_p10), %s348_s26, 3  ;;  %s732_s28 = sshll.u32 (!%p305_p10), %s878_s10, 7 }
  0x13   : > { %378 = vperm.xlu0 (!%p305_p10), %796, %v375_v1   ;;  %557 = vperm.xlu1 (!%p305_p10), %797, %v554_v2   ;;  %v374_v9 = vld [vmem:[%s1077_s2] sm:$0xff] (!%p305_p10)  ;;  %s350_s7 = scalar_lea.vmem (!%p305_p10), [#allocation3], %s712_s27  ;;  %s597_s21 = scalar_lea.sflag (!%p305_p10), [#allocation4], %s348_s26 }
  0x14   : > { %v463_v10 = vld [vmem:[%s1079_s4] sm:$0xff] (!%p305_p10) }
  0x17   : > { %467 = vperm.xlu0 (!%p305_p10), %796, %v464_v4  }
  0x18   : > { %s353_s24 = scalar_select %p352_p11, %s878_s10, 1 }
  0x19   : > { %s890_s10 = smov [#allocation3]  }
  0x1a   : > { %s730_s25 = sshll.u32 %s353_s24, 3  ;;  %s812_s23 = sshll.u32 %s890_s10, 4  ;;  %s813_s23 = int_to_ptr.vmem [resolvable:$false] %s812_s23 }
  0x1b   : > { %s359_s13 = scalar_lea.vmem %s1075_s0, %s730_s25  ;;  %s369_s20 = scalar_lea.vmem %s1076_s1, %s730_s25 }
  0x1c   : > { %v372_v5 = vld [vmem:[%s359_s13] sm:$0xff]  ;;  %s574_s25 = sld [smem:[#allocation2]]  ;;  %s613_s13 = sshll.u32 %s350_s7, 4  ;;  %s1030_s13 = int_to_ptr.vmem [resolvable:$true] %s613_s13 }
  0x1d   : > { %v1011_v6 = vld [vmem:[%s369_s20] sm:$0xff]  ;;  %v382_v7 = vcombine.high %v372_v5, %v372_v5  ;;  %s1028_s20 = scalar_lea.hbm %s1083_s8, %s732_s28  ;;  %s808_s22 = scalar_lea.vmem %s1030_s13, 128 }
  0x1e   : > { %v471_v8 = vcombine.high %v1011_v6, %v1011_v6  ;;  %p809_p12 = scmp.ne.s32.totalorder %s1030_s13, %s808_s22  ;;  %s814_s24 = scalar_lea.vmem %s813_s23, 256 }
  0x1f   : > { %717 = vmatprep.subr.msk.mxu1 %vm387_vm0, %v382_v7  ;;  %p815_p1 = scmp.lt.s32.totalorder %s1030_s13, %s813_s23  ;;  %p816_p2 = scmp.lt.s32.totalorder %s814_s24, %s808_s22 }
  0x20   : > { %720 = vmatprep.subr.msk.mxu0 %vm387_vm0, %v471_v8  ;;  %718 = vmatpush1.msk.msra.mxu1 %vm387_vm0, %v372_v5  ;;  %p810_p13 = pnand %p809_p12, %p979_p4 }
  0x21   : > { %721 = vmatpush1.msk.msra.mxu0 %vm387_vm0, %v1011_v6  ;;  %719 = vmatmul.mubr.msk.f32.vlgmr.msra.gmra.mrb[0].mxu1 %vm383_vm1, %v374_v9  ;;  %p817_p3 = por %p816_p2, %p815_p1 }
  0x22   : > { %722 = vmatmul.mubr.msk.f32.vlgmr.msra.gmra.mrb[0].mxu0 %vm383_vm1, %v463_v10  ;;  %v575_v37 = vstv %s574_s25  ;;  %p811_p0 = pneg %p810_p13 }
  0x24   : > { %p818_p5 = pnand %p817_p3, %p811_p0 }
  0x92   : > { %v379_v11 = vpop.permute.xlu0 %378  ;;  %v558_v23 = vpop.permute.xlu1 %557 }
  0x96   : > { %v468_v17 = vpop.permute.xlu0 %467 }
  0xf4   : > { %v458_v12 = vpop.f32.mrb[0].mxu1 }
  0xf5   : > { %v545_v13 = vpop.f32.mrb[0].mxu0  ;;  %v459_v14 = vadd.f32 %v458_v12, %v379_v11  ;;  %v460_v15 = vpop.f32.mrb[1].mxu1 }
  0xf6   : > { %v547_v16 = vpop.f32.mrb[1].mxu0  ;;  %v461_v18 = vadd.f32 %v460_v15, %v379_v11 }
  0xf7   : > { %v734_v19 = vadd.f32 %v468_v17, %v459_v14 }
  0xf8   : > { %v737_v20 = vadd.f32 %v468_v17, %v461_v18 }
  0xf9   : > { %v735_v21 = vadd.f32 %v734_v19, %v545_v13 }
  0xfa   : > { %v738_v22 = vadd.f32 %v737_v20, %v547_v16 }
  0xfb   : > { %v552_v24 = vmax.f32 %v735_v21, 0.0 }
  0xfc   : > { %v553_v25 = vmax.f32 %v738_v22, 0.0 }
  0xfd   : > { %v560_v26 = vmul.f32 %v558_v23, %v552_v24 }
  0xfe   : > { %v561_v27 = vmul.f32 %v558_v23, %v553_v25 }
  0xff   : > { %v562_v28 = vrot.slane %v560_v26, 4 }
 0x100   : > { %v568_v29 = vrot.slane %v561_v27, 4 }
 0x101   : > { %v563_v30 = vadd.f32 %v562_v28, %v560_v26 }
 0x102   : > { %v569_v31 = vadd.f32 %v568_v29, %v561_v27 }
 0x103   : > { %v564_v32 = vrot.slane %v563_v30, 2 }
 0x104   : > { %v570_v33 = vrot.slane %v569_v31, 2 }
 0x105   : > { %v565_v34 = vadd.f32 %v564_v32, %v563_v30 }
 0x106   : > { %v571_v35 = vadd.f32 %v570_v33, %v569_v31 }
 0x107   : > { %v566_v36 = vrot.slane %v565_v34, 1 }
 0x108   : > { %v572_v38 = vrot.slane %v571_v35, 1 }
 0x109   : > { %v567_v39 = vadd.f32 %v566_v36, %v565_v34 }
 0x10a   : > { %v573_v40 = vadd.f32 %v572_v38, %v571_v35 }
 0x10b   : > { %v576_v41 = vadd.f32 %v575_v37, %v567_v39 }
 0x10c   : > { %v577_v42 = vadd.f32 %v575_v37, %v573_v40 }
 0x10d   : > { %v723_v43 = vmul.f32 -1.442695, %v576_v41 }
 0x10e   : > { %v724_v44 = vmul.f32 -1.442695, %v577_v42 }
 0x10f   : > { %800 = vpow2.f32 %v723_v43 }
 0x110   : > { %802 = vpow2.f32 %v724_v44 }
 0x119   : > { %v801_v45 = vpop.eup %800 }
 0x11a   : > { %v803_v46 = vpop.eup %802  ;;  %v584_v47 = vadd.f32 1.0, %v801_v45 }
 0x11b   : > { %v585_v48 = vadd.f32 1.0, %v803_v46 }
 0x11c   : > { %804 = vrcp.f32 %v584_v47 }
 0x11d   : > { %806 = vrcp.f32 %v585_v48 }
 0x126   : > { %v805_v49 = vpop.eup %804 }
 0x127   : > { %v807_v50 = vpop.eup %806 }
 0x128   : > { %v592_v51 = vcombine.low %v805_v49, %v807_v50 }
 0x12a   : > { %v594_v52 = vmul.f32 %v592_v51, %v1011_v6 }
 0x12c   : > { %595 = vst [vmem:[%s350_s7] sm:$0xff] %v594_v52 }
 0x12d   : > { %821 = shalt.err (!%p818_p5)
}
 0x12e   : > { %s822_s25 = scalar_lea.hbm %s1028_s20, 128  ;;  %s826_s28 = scalar_lea.hbm %s1083_s8, 256 }
 0x12f   : > { %p823_p6 = scmp.ne.s32.totalorder %s1028_s20, %s822_s25  ;;  %p827_p10 = scmp.lt.u32.totalorder %s1028_s20, %s1083_s8 }
 0x130   : > { %p828_p11 = scmp.lt.u32.totalorder %s826_s28, %s822_s25  ;;  %p830_p13 = scmp.lt.u32.totalorder %s822_s25, %s1028_s20 }
 0x131   : > { %p824_p7 = pnand %p823_p6, %p979_p4 }
 0x132   : > { %p829_p12 = por %p828_p11, %p827_p10 }
 0x133   : > { %p825_p9 = pneg %p824_p7 }
 0x134   : > { %p831_p0 = por %p830_p13, %p829_p12 }
 0x136   : > { %p832_p1 = pnand %p831_p0, %p825_p9 }
 0x138   : > { %835 = shalt.err (!%p832_p1)
}
 0x139   : > { %739 = dma.vmem_to_hbm [thread:$0]  (%p979_p4), %s1030_s13, 128, %s1028_s20, %s597_s21  }
 0x13a PF: > { %p745_p2 = scmp.ge.s32.totalorder %s886_s12, 2  ;;  %s625_s17 = sand.u32 1, %s866_s29  }
 0x13b   : > { %s626_s22 = scalar_lea.sflag [#allocation4], %s625_s17 }
 0x13c   : > { %p742_p3 = pnand %p745_p2, %p986_p8 }
 0x13e   : > { %861 = dma.done.wait (!%p742_p3), %s626_s22, 128  }
 0x13f   : > { %863 = vsyncadd (!%p742_p3), %s626_s22, 4294967168  ;;  %s22_s12 = sadd.s32 1, %s886_s12   ;;  %s1086_s29 = smov %s870_s30 }
 0x140   : > { %p19_p5 = scmp.ge.s32.totalorder %s22_s12, 4   ;;  %s1087_s30 = smov %s874_s9 }
 0x141   : > { %s1088_s9 = smov %s992_s19  ;;  %s1089_s10 = smov %s882_s11 }
 0x142   : > { %s1090_s11 = smov %s1092_s14  ;;  %21 = sbr.rel (!%p19_p5) target bundleno = 6 (0x6), region = 90 }
 0x149   :  { %631 = vsyncpa [#allocation4], 1 }
 0x14a   :  { %633 = vsyncpa [#allocation4 + $0x1], 1 }

</bundles_post_ra>
